<compile_context>
chip_gen: v7x
topology: tpu7x:2x2x1
jax: 0.10.0
libtpu: 0.0.40
codegen_flags: <defaults>
</compile_context>

<pallas_src>
import jax
import jax.numpy as jnp
import numpy as np
from jax.experimental import pallas as pl
from jax.experimental.pallas import tpu as pltpu

_LANE = 128
_SUBLANE = 8


def _round_up(x, m):
    return ((x + m - 1) // m) * m


def _cdiv(a, b):
    return (a + b - 1) // b


def _pad2(a, rows, cols):
    pr, pc = rows - a.shape[0], cols - a.shape[1]
    if pr == 0 and pc == 0:
        return a
    return jnp.pad(a, ((0, pr), (0, pc)))


def single_rnn_kernel(x0_ref, x1_ref, wx_ref, b_ref, y0_ref, y1_ref):
    # x0_ref, x1_ref : (TB, Dp)  input tiles (matmul dtype, lane-dense)
    # wx_ref         : (Dp, Dp)  zero-padded Wx, constant index_map (resident)
    # b_ref          : (TB, 1)   per-row bias (fp32); lane-broadcast on the adds
    # y0_ref, y1_ref : (TB, Dp)  fp32 outputs
    wx = wx_ref[...]
    b = b_ref[...]                                    # (TB, 1)

    x0w = jnp.dot(x0_ref[...], wx, preferred_element_type=jnp.float32)
    x1w = jnp.dot(x1_ref[...], wx, preferred_element_type=jnp.float32)

    # Y0 = tanh(X0 @ Wx + b)
    y0 = jnp.tanh(x0w + b)
    # Y1 = tanh(Y0 @ Wx + X1 @ Wx + X1 @ Wx + b)  (X1 @ Wx counted twice, as in torch)
    y0w = jnp.dot(y0.astype(wx.dtype), wx, preferred_element_type=jnp.float32)
    y1 = jnp.tanh(y0w + 2.0 * x1w + b)

    y0_ref[...] = y0.astype(y0_ref.dtype)
    y1_ref[...] = y1.astype(y1_ref.dtype)


def single_rnn_forward(x0, x1, wx, b, *, batch_tile=512, matmul_dtype=jnp.bfloat16):
    """Pallas forward for SingleRNN.

    Shape requirements mirror PyTorch's: n_inputs == n_neurons (Y0 @ Wx) and
    b (n_inputs, 1) must broadcast against (batch, n_neurons), i.e.
    n_inputs in {1, batch}.
    """
    batch, n_inputs = x0.shape
    k_wx, n_neurons = wx.shape
    assert x1.shape == (batch, n_inputs), "X1 must match X0's shape"
    assert k_wx == n_inputs, "Wx rows must equal n_inputs"
    assert n_inputs == n_neurons, (
        "torch.mm(Y0, Wx) requires n_inputs == n_neurons; refusing to pad past it")
    assert b.shape[-1] == 1 and b.shape[0] in (1, batch), (
        "bias (n_inputs, 1) only broadcasts against (batch, n_neurons) if "
        "n_inputs is 1 or equals batch")

    d = n_neurons
    dp = _round_up(max(d, _LANE), _LANE)              # lane-dense padded width

    # ---- batch tiling -------------------------------------------------------
    # Big tiles amortize the ~0.35us/step overhead, but keep >= 2 grid steps
    # (when batch allows) so the parallel axis shards across v7x's 2 TCs, and
    # size tb to minimize last-tile padding waste.
    min_tiles = 2 if batch >= 2 * _SUBLANE else 1
    num_tiles = max(_cdiv(batch, batch_tile), min_tiles)
    tb = _round_up(_cdiv(batch, num_tiles), _SUBLANE)
    num_tiles = _cdiv(batch, tb)
    b_pad = num_tiles * tb

    # ---- operand preparation (skip pads that are no-ops) --------------------
    mm_dt = matmul_dtype
    x0_p = _pad2(x0.astype(mm_dt), b_pad, dp)
    x1_p = _pad2(x1.astype(mm_dt), b_pad, dp)
    # Zero-pad Wx rows AND columns (see module docstring for why this keeps
    # valid Y1 columns exact even with a nonzero bias).
    wx_p = _pad2(wx.astype(mm_dt), dp, dp)
    # Compact per-row bias: (b_pad, 1), broadcast across lanes inside the kernel.
    b_rows = jnp.broadcast_to(b.astype(jnp.float32), (batch, 1))
    b_rows = _pad2(b_rows, b_pad, 1)

    # ---- VMEM budget ---------------------------------------------------------
    isz = jnp.dtype(mm_dt).itemsize
    ws = (2 * 2 * tb * dp * isz          # x0, x1 blocks (double-buffered)
          + 2 * dp * dp * isz            # resident Wx (default double buffer)
          + 2 * 2 * tb * _LANE * 4       # bias blocks (lane-padded in VMEM)
          + 2 * 2 * tb * dp * 4          # y0, y1 output blocks (double-buffered)
          + 5 * tb * dp * 4)             # fp32 temporaries headroom
    vmem_limit = int(min(max(ws * 3 // 2 + (4 << 20), 32 << 20), 64 << 20))

    grid = (num_tiles,)

    y0_p, y1_p = pl.pallas_call(
        single_rnn_kernel,
        out_shape=(
            jax.ShapeDtypeStruct((b_pad, dp), jnp.float32),
            jax.ShapeDtypeStruct((b_pad, dp), jnp.float32),
        ),
        grid_spec=pltpu.PrefetchScalarGridSpec(
            num_scalar_prefetch=0,
            grid=grid,
            in_specs=[
                pl.BlockSpec((tb, dp), lambda i: (i, 0)),   # X0 tile
                pl.BlockSpec((tb, dp), lambda i: (i, 0)),   # X1 tile
                pl.BlockSpec((dp, dp), lambda i: (0, 0)),   # Wx (resident)
                pl.BlockSpec((tb, 1), lambda i: (i, 0)),    # per-row bias column
            ],
            out_specs=(
                pl.BlockSpec((tb, dp), lambda i: (i, 0)),
                pl.BlockSpec((tb, dp), lambda i: (i, 0)),
            ),
        ),
        compiler_params=pltpu.CompilerParams(
            dimension_semantics=("parallel",),
            vmem_limit_bytes=vmem_limit,
        ),
    )(x0_p, x1_p, wx_p, b_rows)

    # Strip padding.
    return y0_p[:batch, :n_neurons], y1_p[:batch, :n_neurons]


def _reference(x0, x1, wx, b, dtype=jnp.float32):
    """Pure-JAX reference with the same input rounding as the kernel path."""
    x0 = x0.astype(dtype).astype(jnp.float32)
    x1 = x1.astype(dtype).astype(jnp.float32)
    wx = wx.astype(dtype).astype(jnp.float32)
    b = b.astype(jnp.float32)
    y0 = jnp.tanh(x0 @ wx + b)
    y1 = jnp.tanh(y0.astype(dtype).astype(jnp.float32) @ wx + 2.0 * (x1 @ wx) + b)
    return y0, y1


if __name__ == "__main__":
    # Small shapes consistent with the module: batch == n_inputs == n_neurons
    # (required by the original forward's shapes / bias broadcasting).
    batch = 32
    n_inputs = 32
    n_neurons = 32

    key = jax.random.PRNGKey(0)
    k_wx, k_wy, k_x0, k_x1, k_b = jax.random.split(key, 5)

    # Deterministic parameter init mirroring __init__ (torch.randn / torch.zeros).
    Wx = jax.random.normal(k_wx, (n_inputs, n_neurons), dtype=jnp.float32)
    Wy = jax.random.normal(k_wy, (n_neurons, n_neurons), dtype=jnp.float32)  # unused in forward
    b = jnp.zeros((n_inputs, 1), dtype=jnp.float32)

    X0 = jax.random.normal(k_x0, (batch, n_inputs), dtype=jnp.float32)
    X1 = jax.random.normal(k_x1, (batch, n_inputs), dtype=jnp.float32)

    # 1) Default (bf16 matmul inputs, f32 accumulate) path — compare against a
    #    reference that rounds inputs identically.
    y0_bf, y1_bf = single_rnn_forward(X0, X1, Wx, b)
    jax.block_until_ready((y0_bf, y1_bf))
    y0_rb, y1_rb = _reference(X0, X1, Wx, b, dtype=jnp.bfloat16)
    assert y0_bf.shape == (batch, n_neurons) and y1_bf.shape == (batch, n_neurons)
    assert np.allclose(np.asarray(y0_bf), np.asarray(y0_rb), atol=2e-2, rtol=2e-2)
    assert np.allclose(np.asarray(y1_bf), np.asarray(y1_rb), atol=2e-2, rtol=2e-2)

    # 2) fp32 matmul path — faithful to the torch fp32 semantics.
    y0_f, y1_f = single_rnn_forward(X0, X1, Wx, b, matmul_dtype=jnp.float32)
    jax.block_until_ready((y0_f, y1_f))
    y0_rf, y1_rf = _reference(X0, X1, Wx, b, dtype=jnp.float32)
    assert np.allclose(np.asarray(y0_f), np.asarray(y0_rf), atol=2e-2, rtol=2e-2)
    assert np.allclose(np.asarray(y1_f), np.asarray(y1_rf), atol=2e-2, rtol=2e-2)

    # 3) Nonzero bias — exercises the per-row (n_inputs, 1) broadcast semantics
    #    (the module inits b = zeros, so test it explicitly once).
    b_nz = 0.5 * jax.random.normal(k_b, (n_inputs, 1), dtype=jnp.float32)
    y0_b, y1_b = single_rnn_forward(X0, X1, Wx, b_nz, matmul_dtype=jnp.float32)
    jax.block_until_ready((y0_b, y1_b))
    y0_rn, y1_rn = _reference(X0, X1, Wx, b_nz, dtype=jnp.float32)
    assert np.allclose(np.asarray(y0_b), np.asarray(y0_rn), atol=2e-2, rtol=2e-2)
    assert np.allclose(np.asarray(y1_b), np.asarray(y1_rn), atol=2e-2, rtol=2e-2)

    print("KERNEL_OK")
</pallas_src>

<mosaic_0001>
module attributes {stable_mosaic.version = 11 : i64} {
  func.func @single_rnn_kernel(%arg0: i32, %arg1: memref<16x128xbf16, #tpu.memory_space<vmem>>, %arg2: memref<16x128xbf16, #tpu.memory_space<vmem>>, %arg3: memref<128x128xbf16, #tpu.memory_space<vmem>>, %arg4: memref<16x1xf32, #tpu.memory_space<vmem>>, %arg5: memref<16x128xf32, #tpu.memory_space<vmem>>, %arg6: memref<16x128xf32, #tpu.memory_space<vmem>>) attributes {dimension_semantics = [#tpu.dimension_semantics<parallel>], iteration_bounds = array<i64: 2>, scalar_prefetch = 0 : i64, scratch_operands = 0 : i64, tpu.core_type = #tpu.core_type<tc>, window_params = [{transform_indices = @transform_0, window_bounds = array<i64: 16, 128>}, {transform_indices = @transform_1, window_bounds = array<i64: 16, 128>}, {pipeline_mode = #tpu.pipeline_mode<synchronous>, transform_indices = @transform_2, window_bounds = array<i64: 128, 128>}, {transform_indices = @transform_3, window_bounds = array<i64: 16, 1>}, {transform_indices = @transform_4, window_bounds = array<i64: 16, 128>}, {transform_indices = @transform_5, window_bounds = array<i64: 16, 128>}]} {
    %c0 = arith.constant 0 : index
    %c0_0 = arith.constant 0 : index
    %0 = vector.load %arg3[%c0, %c0_0] : memref<128x128xbf16, #tpu.memory_space<vmem>>, vector<128x128xbf16>
    %c0_1 = arith.constant 0 : index
    %c0_2 = arith.constant 0 : index
    %1 = vector.load %arg4[%c0_1, %c0_2] : memref<16x1xf32, #tpu.memory_space<vmem>>, vector<16x1xf32>
    %c0_3 = arith.constant 0 : index
    %c0_4 = arith.constant 0 : index
    %2 = vector.load %arg1[%c0_3, %c0_4] : memref<16x128xbf16, #tpu.memory_space<vmem>>, vector<16x128xbf16>
    %cst = arith.constant dense<0.000000e+00> : vector<16x128xf32>
    %3 = tpu.matmul %2, %0, %cst {dimension_numbers = #tpu.dot_dimension_numbers<[1], [0], [0], [1], [0, 0, 1, 1], [], []>} : vector<16x128xbf16>, vector<128x128xbf16>, vector<16x128xf32> -> vector<16x128xf32>
    %c0_5 = arith.constant 0 : index
    %c0_6 = arith.constant 0 : index
    %4 = vector.load %arg2[%c0_5, %c0_6] : memref<16x128xbf16, #tpu.memory_space<vmem>>, vector<16x128xbf16>
    %cst_7 = arith.constant dense<0.000000e+00> : vector<16x128xf32>
    %5 = tpu.matmul %4, %0, %cst_7 {dimension_numbers = #tpu.dot_dimension_numbers<[1], [0], [0], [1], [0, 0, 1, 1], [], []>} : vector<16x128xbf16>, vector<128x128xbf16>, vector<16x128xf32> -> vector<16x128xf32>
    %6 = vector.broadcast %1 : vector<16x1xf32> to vector<16x128xf32>
    %7 = arith.addf %3, %6 : vector<16x128xf32>
    %8 = math.tanh %7 : vector<16x128xf32>
    %9 = arith.truncf %8 : vector<16x128xf32> to vector<16x128xbf16>
    %cst_8 = arith.constant dense<0.000000e+00> : vector<16x128xf32>
    %10 = tpu.matmul %9, %0, %cst_8 {dimension_numbers = #tpu.dot_dimension_numbers<[1], [0], [0], [1], [0, 0, 1, 1], [], []>} : vector<16x128xbf16>, vector<128x128xbf16>, vector<16x128xf32> -> vector<16x128xf32>
    %cst_9 = arith.constant 2.000000e+00 : f32
    %11 = vector.broadcast %cst_9 : f32 to vector<16x128xf32>
    %12 = arith.mulf %11, %5 : vector<16x128xf32>
    %13 = arith.addf %10, %12 : vector<16x128xf32>
    %14 = vector.broadcast %1 : vector<16x1xf32> to vector<16x128xf32>
    %15 = arith.addf %13, %14 : vector<16x128xf32>
    %16 = math.tanh %15 : vector<16x128xf32>
    %c0_10 = arith.constant 0 : index
    %c0_11 = arith.constant 0 : index
    %17 = vector.load %arg5[%c0_10, %c0_11] : memref<16x128xf32, #tpu.memory_space<vmem>>, vector<16x128xf32>
    tpu.vector_store %arg5[%c0_10, %c0_11], %8 {strides = array<i32>} : memref<16x128xf32, #tpu.memory_space<vmem>>, vector<16x128xf32>,
    %c0_12 = arith.constant 0 : index
    %c0_13 = arith.constant 0 : index
    %18 = vector.load %arg6[%c0_12, %c0_13] : memref<16x128xf32, #tpu.memory_space<vmem>>, vector<16x128xf32>
    tpu.vector_store %arg6[%c0_12, %c0_13], %16 {strides = array<i32>} : memref<16x128xf32, #tpu.memory_space<vmem>>, vector<16x128xf32>,
    return
  }
  func.func @transform_0(%arg0: i32) -> (i32, i32) {
    %c0_i32 = arith.constant 0 : i32
    %c0_i32_0 = arith.constant 0 : i32
    return %arg0, %c0_i32 : i32, i32
  }
  func.func @transform_1(%arg0: i32) -> (i32, i32) {
    %c0_i32 = arith.constant 0 : i32
    %c0_i32_0 = arith.constant 0 : i32
    return %arg0, %c0_i32 : i32, i32
  }
  func.func @transform_2(%arg0: i32) -> (i32, i32) {
    %c0_i32 = arith.constant 0 : i32
    %c0_i32_0 = arith.constant 0 : i32
    %c0_i32_1 = arith.constant 0 : i32
    return %c0_i32, %c0_i32_0 : i32, i32
  }
  func.func @transform_3(%arg0: i32) -> (i32, i32) {
    %c0_i32 = arith.constant 0 : i32
    %c0_i32_0 = arith.constant 0 : i32
    return %arg0, %c0_i32 : i32, i32
  }
  func.func @transform_4(%arg0: i32) -> (i32, i32) {
    %c0_i32 = arith.constant 0 : i32
    %c0_i32_0 = arith.constant 0 : i32
    return %arg0, %c0_i32 : i32, i32
  }
  func.func @transform_5(%arg0: i32) -> (i32, i32) {
    %c0_i32 = arith.constant 0 : i32
    %c0_i32_0 = arith.constant 0 : i32
    return %arg0, %c0_i32 : i32, i32
  }
}

</mosaic_0001>

<bundles_post_ra>
// kernel: tpu_custom_call.1
= control target key start
LH: loop header
LB: loop body
LE: loop exit
PB: predicated region body
PF: predicated region fallthrough
CT: control target
= control target key end

     0   :  { %11 = vsyncpa [#allocation3], 0  ;;  %s1292_s0 = inlined_call_operand.vmem [shape: bf16[32,128], index: 0, kind: input, shape index: {}]   ;;  %s1293_s1 = inlined_call_operand.vmem [shape: bf16[32,128], index: 1, kind: input, shape index: {}]   ;;  %s1294_s2 = inlined_call_operand.hbm [shape: bf16[128,128], index: 2, kind: input, shape index: {}]   ;;  %s1295_s3 = inlined_call_operand.vmem [shape: f32[32,1], index: 3, kind: input, shape index: {}]   ;;  %s1296_s4 = inlined_call_operand.hbm [shape: f32[32,128], index: 4, kind: output, shape index: {0}]   ;;  %s1297_s5 = inlined_call_operand.hbm [shape: f32[32,128], index: 5, kind: output, shape index: {1}]  }
   0x1   :  { %12 = vsyncpa [#allocation4], 0 }
   0x2   :  { %14 = vsyncpa [#allocation4 + $0x1], 0 }
   0x3   :  { %15 = vsyncpa [#allocation7], 0 }
   0x4   :  { %17 = vsyncpa [#allocation7 + $0x1], 0  ;;  %s1061_s18 = smov 0   ;;  %s1063_s19 = smov 0  }
   0x5   :  { %s1065_s20 = smov 0   ;;  %s1067_s21 = smov 0  }
   0x6 LB: > { %s1082_s22 = sadd.s32 4294967295, %s1019_s21   ;;  %s691_s23 = sadd.s32 4294967294, %s1019_s21   ;;  %s1019_s21 = sphi %s1067_s21, %s1313_s21   ;;  %s1015_s20 = sphi %s1065_s20, %s1312_s20   ;;  %s1011_s19 = sphi %s1063_s19, %s1311_s19   ;;  %s1007_s18 = sphi %s1061_s18, %s1310_s18  }
   0x7   : > { %s1086_s24 = sadd.s32 1, %s1019_s21   ;;  %s129_s25 = sadd.s32 1, %s1015_s20 }
   0x8   : > { %s126_s26 = ssub.s32 %s1019_s21, %s1086_s24  ;;  %p139_p0 = scmp.ne.s32.totalorder %s1015_s20, %s1011_s19 }
   0x9   : > { %p127_p1 = scmp.eq.s32.totalorder %s126_s26, 0  ;;  %p140_p2 = scmp.eq.s32.totalorder %s1082_s22, 1 }
   0xa   : > { %p145_p3 = scmp.ne.s32.totalorder %s1011_s19, %s1007_s18  ;;  %p146_p4 = scmp.eq.s32.totalorder %s691_s23, 1 }
   0xb   : > { %s1097_s27 = scalar_select %p127_p1, %s1015_s20, %s129_s25  }
   0xc   : > { %p1099_p5 = por %p140_p2, %p139_p0  ;;  %p1103_p6 = por %p146_p4, %p145_p3 }
   0xd   : > { %p692_p7 = scmp.ge.s32.totalorder %s1019_s21, 1  ;;  %p179_p8 = scmp.lt.s32.totalorder %s1019_s21, 3 }
   0xe   : > { %s1301_s28 = scalar_select %p1099_p5, 1, 0 }
   0xf   : > { %s1302_s29 = scalar_select %p1103_p6, 1, 0 }
  0x10   : > { %p1298_p9 = scmp.eq.s32.totalorder %s1082_s22, 0  ;;  %p1110_p10 = pnand %p692_p7, %p179_p8 }
  0x11   : > { %s1021_s6 = smov [#allocation2]   ;;  %s893_s11 = scalar_lea.hbm %s1294_s2, 1024 }
  0x12   : > { %s1303_s30 = scalar_select %p1110_p10, 1, 0 }
  0x13   : > { %s191_s7 = sshll.u32 %s1021_s6, 4  ;;  %p820_p11 = pneg %p1110_p10  ;;  %s192_s7 = int_to_ptr.vmem [resolvable:$true] %s191_s7 }
  0x14   : > { %p894_p13 = scmp.ne.s32.totalorder %s1294_s2, %s893_s11  ;;  %p900_p3 = scmp.lt.u32.totalorder %s893_s11, %s1294_s2 }
  0x15   : > { %p1118_p12 = pnand %p1298_p9, %p820_p11 }
  0x17   : > { %p895_p0 = pneg %p1118_p12 }
  0x19   : > { %p896_p1 = pnand %p895_p0, %p894_p13 }
  0x1b   : > { %p897_p2 = pneg %p896_p1 }
  0x1d   : > { %p902_p4 = pnand %p900_p3, %p897_p2 }
  0x1f   : > { %905 = shalt.err (!%p902_p4)
}
  0x20   : > { %s906_s16 = scalar_lea.vmem %s192_s7, 1024  ;;  %p914_p9 = scmp.lt.s32.totalorder %s192_s7, %s192_s7 }
  0x21   : > { %p907_p7 = scmp.ne.s32.totalorder %s192_s7, %s906_s16  ;;  %p915_p6 = scmp.lt.s32.totalorder %s906_s16, %s906_s16 }
  0x23   : > { %p909_p8 = pnand %p907_p7, %p895_p0  ;;  %p916_p5 = por %p915_p6, %p914_p9 }
  0x25   : > { %p910_p11 = pneg %p909_p8 }
  0x27   : > { %p917_p10 = pnand %p916_p5, %p910_p11 }
  0x29   : > { %920 = shalt.err (!%p917_p10)
}
  0x2a   : > { %s1022_s17 = smov 64   ;;  %s1023_s23 = smov 4  }
  0x2b   : > { %823 = dma.hbm_to_vmem [thread:$0]  (!%p1118_p12), %s1294_s2, 1024, %s192_s7, [#allocation3], %s1022_s17, %s1022_s17, %s1023_s23  }
  0x2c   : > { %p1305_p13 = scmp.ne.s32.totalorder %s1303_s30, 0 }
  0x2d   : > { %p1306_p1 = scmp.eq.s32.totalorder (!%p1305_p13), %s1082_s22, 0 }
  0x2e   : > { %234 = sbr.rel (%p1305_p13) target bundleno = 560 (0x230), region = 36 }
  0x35   : > { %994 = dma.done.wait (%p1306_p1), [#allocation3], 1024   ;;  %p1307_p0 = pmov %p1306_p1 }
  0x36   : > { %s699_s6 = sshll.u32 %s1082_s22, 1  ;;  %v1024_v0 = vmov 0.0   ;;  %vm1025_vm0 = vmmov 0   ;;  %v1026_v1 = vmov 0   ;;  %v875_v2 = vld [vmem:[#allocation2] sm:$0xff]   ;;  %v876_v3 = vld [vmem:[#allocation2 + $0x8] sm:$0xff]  }
  0x37   : > { %996 = vsyncadd (%p1307_p0), [#allocation3], 4294966272  ;;  %772 = vmatprep.subr.bf16.mxu1 %v1024_v0  ;;  %788 = vmatprep.mubr.msk.bf16.mxu1 %vm1025_vm0, %v1024_v0  ;;  %p278_p5 = scmp.lt.s32.totalorder %s699_s6, 3  ;;  %v877_v4 = vld [vmem:[#allocation2 + $0x10] sm:$0xff]   ;;  %v878_v6 = vld [vmem:[#allocation2 + $0x18] sm:$0xff]   ;;  %s1194_s17 = sand.u32 1, %s1011_s19  }
  0x38   : > { %874 = vset.pattern.permute.xlu0 %v1026_v1  ;;  %752 = vmatprep.subr.bf16.mxu0 %v1024_v0  ;;  %v879_v8 = vld [vmem:[#allocation2 + $0x20] sm:$0xff]   ;;  %v880_v9 = vld [vmem:[#allocation2 + $0x28] sm:$0xff]   ;;  %v881_v10 = vld [vmem:[#allocation2 + $0x30] sm:$0xff]   ;;  %s697_s23 = sshll.u32 %s1194_s17, 4  ;;  %s723_s26 = sshll.u32 %s1082_s22, 8 }
  0x39   : > { %768 = vmatprep.mubr.msk.bf16.mxu0 %vm1025_vm0, %v1024_v0  ;;  %s1315_s6 = smov (!%p278_p5, %s699_s6), 3  ;;  %773 = vmatpush3.bf16.msra.mxu1 %v875_v2  ;;  %v882_v11 = vld [vmem:[#allocation2 + $0x38] sm:$0xff]   ;;  %s269_s25 = scalar_lea.vmem [#allocation5], %s697_s23 }
  0x3a   : > { %753 = vmatpush3.bf16.msra.mxu0 %v875_v2  ;;  %774 = vmatprep.subr.bf16.mxu1 %v1024_v0  ;;  %s704_s30 = sshll.u32 %s1315_s6, 3  ;;  %s700_s7 = sshll.u32 %s1315_s6, 2 }
  0x3b   : > { %754 = vmatprep.subr.bf16.mxu0 %v1024_v0  ;;  %s293_s10 = scalar_lea.vmem %s1295_s3, %s704_s30  ;;  %s1160_s13 = scalar_lea.vmem %s1292_s0, %s700_s7 }
  0x3c   : > { %s1166_s16 = scalar_lea.vmem %s1293_s1, %s700_s7  ;;  %v314_v5 = vld [vmem:[%s293_s10] sm:$0xff]  ;;  %v315_v7 = vld [vmem:[%s293_s10 + $0x8] sm:$0xff]  ;;  %s1205_s7 = scalar_lea.hbm %s1296_s4, %s723_s26 }
  0x3d   : > { %775 = vmatpush3.bf16.msra.mxu1 %v876_v3  ;;  %417 = vperm.xlu0 %874, %v314_v5   ;;  %v883_v12 = vld [vmem:[%s1160_s13] sm:$0xff]   ;;  %s545_s8 = sshll.u32 %s269_s25, 4  ;;  %s527_s9 = scalar_lea.sflag [#allocation4], %s1194_s17  ;;  %s1207_s8 = int_to_ptr.vmem [resolvable:$true] %s545_s8 }
  0x3e   : > { %755 = vmatpush3.bf16.msra.mxu0 %v876_v3  ;;  %776 = vmatprep.subr.bf16.mxu1 %v1024_v0  ;;  %v884_v13 = vld [vmem:[%s1166_s16] sm:$0xff]   ;;  %s921_s10 = scalar_lea.vmem %s1207_s8, 256  ;;  %p1308_p9 = scmp.ne.s32.totalorder %s1301_s28, 0 }
  0x3f   : > { %756 = vmatprep.subr.bf16.mxu0 %v1024_v0  ;;  %p922_p6 = scmp.ne.s32.totalorder %s1207_s8, %s921_s10  ;;  %s1027_s11 = smov [#allocation5]  }
  0x40   : > { %s925_s12 = sshll.u32 %s1027_s11, 4  ;;  %s926_s12 = int_to_ptr.vmem [resolvable:$false] %s925_s12 }
  0x41   : > { %777 = vmatpush3.bf16.msra.mxu1 %v877_v4  ;;  %422 = vperm.xlu0 %874, %v315_v7   ;;  %p923_p10 = pnand %p922_p6, %p1308_p9  ;;  %s927_s13 = scalar_lea.vmem %s926_s12, 512 }
  0x42   : > { %778 = vmatprep.subr.bf16.mxu1 %v1024_v0  ;;  %757 = vmatpush3.bf16.msra.mxu0 %v877_v4  ;;  %p928_p2 = scmp.lt.s32.totalorder %s1207_s8, %s926_s12  ;;  %p929_p3 = scmp.lt.s32.totalorder %s927_s13, %s921_s10 }
  0x43   : > { %758 = vmatprep.subr.bf16.mxu0 %v1024_v0  ;;  %p924_p12 = pneg %p923_p10 }
  0x44   : > { %p930_p4 = por %p929_p3, %p928_p2 }
  0x45   : > { %779 = vmatpush3.bf16.msra.mxu1 %v878_v6 }
  0x46   : > { %780 = vmatprep.subr.bf16.mxu1 %v1024_v0  ;;  %759 = vmatpush3.bf16.msra.mxu0 %v878_v6  ;;  %p931_p7 = pnand %p930_p4, %p924_p12 }
  0x47   : > { %760 = vmatprep.subr.bf16.mxu0 %v1024_v0 }
  0x49   : > { %781 = vmatpush3.bf16.msra.mxu1 %v879_v8 }
  0x4a   : > { %782 = vmatprep.subr.bf16.mxu1 %v1024_v0  ;;  %761 = vmatpush3.bf16.msra.mxu0 %v879_v8 }
  0x4b   : > { %762 = vmatprep.subr.bf16.mxu0 %v1024_v0 }
  0x4d   : > { %783 = vmatpush3.bf16.msra.mxu1 %v880_v9 }
  0x4e   : > { %784 = vmatprep.subr.bf16.mxu1 %v1024_v0  ;;  %763 = vmatpush3.bf16.msra.mxu0 %v880_v9 }
  0x4f   : > { %764 = vmatprep.subr.bf16.mxu0 %v1024_v0 }
  0x51   : > { %785 = vmatpush3.bf16.msra.mxu1 %v881_v10 }
  0x52   : > { %786 = vmatprep.subr.bf16.mxu1 %v1024_v0  ;;  %765 = vmatpush3.bf16.msra.mxu0 %v881_v10 }
  0x53   : > { %766 = vmatprep.subr.bf16.mxu0 %v1024_v0 }
  0x55   : > { %787 = vmatpush3.bf16.msra.mxu1 %v882_v11 }
  0x56   : > { %767 = vmatpush3.bf16.msra.mxu0 %v882_v11 }
  0x57   : > { %792 = vmatprep.subr.bf16.mxu0 %v1024_v0 }
  0x58   : > { %789 = vmatmul.mubr.bf16.vlgmr.msra.gmra.mrb[0].mxu1 %v883_v12 }
  0x59   : > { %769 = vmatmul.mubr.bf16.vlgmr.msra.gmra.mrb[0].mxu0 %v884_v13 }
  0x5a   : > { %793 = vmatpush3.bf16.msra.mxu0 %v875_v2  ;;  %808 = vmatprep.mubr.msk.bf16.mxu0 %vm1025_vm0, %v1024_v0 }
  0x5b   : > { %794 = vmatprep.subr.bf16.mxu0 %v1024_v0 }
  0x5e   : > { %795 = vmatpush3.bf16.msra.mxu0 %v876_v3 }
  0x5f   : > { %796 = vmatprep.subr.bf16.mxu0 %v1024_v0 }
  0x62   : > { %797 = vmatpush3.bf16.msra.mxu0 %v877_v4 }
  0x63   : > { %798 = vmatprep.subr.bf16.mxu0 %v1024_v0 }
  0x66   : > { %799 = vmatpush3.bf16.msra.mxu0 %v878_v6 }
  0x67   : > { %800 = vmatprep.subr.bf16.mxu0 %v1024_v0 }
  0x6a   : > { %801 = vmatpush3.bf16.msra.mxu0 %v879_v8 }
  0x6b   : > { %802 = vmatprep.subr.bf16.mxu0 %v1024_v0 }
  0x6e   : > { %803 = vmatpush3.bf16.msra.mxu0 %v880_v9 }
  0x6f   : > { %804 = vmatprep.subr.bf16.mxu0 %v1024_v0 }
  0x72   : > { %805 = vmatpush3.bf16.msra.mxu0 %v881_v10 }
  0x73   : > { %806 = vmatprep.subr.bf16.mxu0 %v1024_v0 }
  0x76   : > { %807 = vmatpush3.bf16.msra.mxu0 %v882_v11 }
  0xbc   : > { %v418_v14 = vpop.permute.xlu0 %417 }
  0xc0   : > { %v1190_v15 = vpop.permute.xlu0 %422 }
 0x12b   : > { %v465_v16 = vpop.f32.mrb[0].mxu1 }
 0x12c   : > { %v466_v17 = vadd.f32 %v465_v16, %v418_v14  ;;  %v790_v18 = vpop.f32.mrb[1].mxu1  ;;  %v408_v19 = vpop.f32.mrb[0].mxu0 }
 0x12d   : > { %v468_v20 = vpop.f32.mrb[2].mxu1  ;;  %v770_v21 = vpop.f32.mrb[1].mxu0 }
 0x12e   : > { %885 = vtanh.f32 %v466_v17  ;;  %v469_v22 = vadd.f32 %v468_v20, %v1190_v15  ;;  %v791_v23 = vpop.f32.mrb[3].mxu1  ;;  %v411_v24 = vpop.f32.mrb[2].mxu0 }
 0x12f   : > { %v771_v25 = vpop.f32.mrb[3].mxu0 }
 0x130   : > { %887 = vtanh.f32 %v469_v22 }
 0x138   : > { %v886_v26 = vpop.eup %885 }
 0x139   : > { %522 = vst [vmem:[%s269_s25] sm:$0xff] %v886_v26 }
 0x13a   : > { %v888_v27 = vpop.eup %887 }
 0x13b   : > { %v474_v28 = vpack.c.bf16 %v888_v27, %v886_v26  ;;  %523 = vst [vmem:[%s269_s25 + $0x8] sm:$0xff] %v888_v27 }
 0x13d   : > { %809 = vmatmul.mubr.bf16.vlgmr.msra.gmra.mrb[4].mxu0 %v474_v28 }
 0x13e   : > { %934 = shalt.err (!%p931_p7)
}
 0x13f   : > { %s935_s14 = scalar_lea.hbm %s1205_s7, 256  ;;  %s939_s25 = scalar_lea.hbm %s1296_s4, 512 }
 0x140   : > { %p936_p8 = scmp.ne.s32.totalorder %s1205_s7, %s935_s14  ;;  %p940_p1 = scmp.lt.u32.totalorder %s1205_s7, %s1296_s4 }
 0x141   : > { %p941_p0 = scmp.lt.u32.totalorder %s939_s25, %s935_s14  ;;  %p943_p6 = scmp.lt.u32.totalorder %s935_s14, %s1205_s7 }
 0x142   : > { %p937_p11 = pnand %p936_p8, %p1308_p9 }
 0x143   : > { %p942_p5 = por %p941_p0, %p940_p1 }
 0x144   : > { %p938_p13 = pneg %p937_p11 }
 0x145   : > { %p944_p10 = por %p943_p6, %p942_p5 }
 0x147   : > { %p945_p12 = pnand %p944_p10, %p938_p13 }
 0x149   : > { %948 = shalt.err (!%p945_p12)
}
 0x14a   : > { %s1028_s10 = smov 128   ;;  %s1029_s11 = smov 8   ;;  %v475_v29 = vmul.f32 2.0, %v408_v19  ;;  %v476_v31 = vmul.f32 2.0, %v411_v24 }
 0x14b   : > { %816 = dma.vmem_to_hbm [thread:$0]  (%p1308_p9), %s1207_s8, 256, %s1205_s7, %s527_s9, %s1028_s10, %s1028_s10, %s1029_s11  }
 0x14c   : > { %s276_s12 = scalar_lea.vmem [#allocation6], %s697_s23  ;;  %s1244_s9 = scalar_lea.hbm %s1297_s5, %s723_s26 }
 0x14d   : > { %s561_s13 = sshll.u32 %s276_s12, 4  ;;  %s532_s14 = scalar_lea.sflag [#allocation7], %s1194_s17  ;;  %s1246_s13 = int_to_ptr.vmem [resolvable:$true] %s561_s13 }
 0x14e   : > { %s949_s15 = scalar_lea.vmem %s1246_s13, 256  ;;  %s1030_s23 = smov [#allocation6]  }
 0x14f   : > { %p950_p2 = scmp.ne.s32.totalorder %s1246_s13, %s949_s15  ;;  %s953_s22 = sshll.u32 %s1030_s23, 4  ;;  %s954_s22 = int_to_ptr.vmem [resolvable:$false] %s953_s22 }
 0x150   : > { %s955_s16 = scalar_lea.vmem %s954_s22, 512  ;;  %p956_p7 = scmp.lt.s32.totalorder %s1246_s13, %s954_s22 }
 0x151   : > { %p951_p3 = pnand %p950_p2, %p1308_p9  ;;  %p957_p8 = scmp.lt.s32.totalorder %s955_s16, %s949_s15 }
 0x153   : > { %p952_p4 = pneg %p951_p3  ;;  %p958_p11 = por %p957_p8, %p956_p7 }
 0x155   : > { %p959_p13 = pnand %p958_p11, %p952_p4 }
 0x210   : > { %v511_v30 = vpop.f32.mrb[4].mxu0 }
 0x211   : > { %v512_v32 = vadd.f32 %v511_v30, %v475_v29  ;;  %v810_v33 = vpop.f32.mrb[5].mxu0 }
 0x212   : > { %v514_v34 = vpop.f32.mrb[6].mxu0 }
 0x213   : > { %v518_v35 = vadd.f32 %v512_v32, %v418_v14  ;;  %v515_v36 = vadd.f32 %v514_v34, %v476_v31  ;;  %v811_v37 = vpop.f32.mrb[7].mxu0 }
 0x215   : > { %889 = vtanh.f32 %v518_v35  ;;  %v519_v38 = vadd.f32 %v515_v36, %v1190_v15 }
 0x217   : > { %891 = vtanh.f32 %v519_v38 }
 0x21f   : > { %v890_v39 = vpop.eup %889 }
 0x220   : > { %524 = vst [vmem:[%s276_s12] sm:$0xff] %v890_v39 }
 0x221   : > { %v892_v40 = vpop.eup %891 }
 0x222   : > { %525 = vst [vmem:[%s276_s12 + $0x8] sm:$0xff] %v892_v40 }
 0x223   : > { %962 = shalt.err (!%p959_p13)
}
 0x224   : > { %s963_s26 = scalar_lea.hbm %s1244_s9, 256  ;;  %s967_s30 = scalar_lea.hbm %s1297_s5, 512 }
 0x225   : > { %p964_p1 = scmp.ne.s32.totalorder %s1244_s9, %s963_s26  ;;  %p968_p6 = scmp.lt.u32.totalorder %s1244_s9, %s1297_s5 }
 0x226   : > { %p969_p10 = scmp.lt.u32.totalorder %s967_s30, %s963_s26  ;;  %p971_p2 = scmp.lt.u32.totalorder %s963_s26, %s1244_s9 }
 0x227   : > { %p965_p0 = pnand %p964_p1, %p1308_p9 }
 0x228   : > { %p970_p12 = por %p969_p10, %p968_p6 }
 0x229   : > { %p966_p5 = pneg %p965_p0 }
 0x22a   : > { %p972_p3 = por %p971_p2, %p970_p12 }
 0x22c   : > { %p973_p4 = pnand %p972_p3, %p966_p5 }
 0x22e   : > { %976 = shalt.err (!%p973_p4)
}
 0x22f   : > { %817 = dma.vmem_to_hbm [thread:$0]  (%p1308_p9), %s1246_s13, 256, %s1244_s9, %s532_s14, %s1028_s10, %s1028_s10, %s1029_s11  }
 0x230 PF: > { %p833_p7 = scmp.ge.s32.totalorder %s1019_s21, 2  ;;  %s576_s8 = sand.u32 1, %s1007_s18  }
 0x231   : > { %p1309_p8 = scmp.ne.s32.totalorder %s1302_s29, 0  ;;  %s577_s15 = scalar_lea.sflag [#allocation4], %s576_s8 }
 0x233   : > { %p825_p11 = pnand %p833_p7, %p1309_p8 }
 0x235   : > { %998 = dma.done.wait (!%p825_p11), %s577_s15, 256  }
 0x236   : > { %1000 = vsyncadd (!%p825_p11), %s577_s15, 4294967040  ;;  %s586_s28 = scalar_lea.sflag [#allocation7], %s576_s8 }
 0x237   : > { %1002 = dma.done.wait (!%p825_p11), %s586_s28, 256  }
 0x238   : > { %1004 = vsyncadd (!%p825_p11), %s586_s28, 4294967040  ;;  %p20_p9 = scmp.ge.s32.totalorder %s1086_s24, 4   ;;  %s1310_s18 = smov %s1011_s19 }
 0x239   : > { %s1311_s19 = smov %s1015_s20  ;;  %s1312_s20 = smov %s1097_s27 }
 0x23a   : > { %s1313_s21 = smov %s1086_s24  ;;  %22 = sbr.rel (!%p20_p9) target bundleno = 6 (0x6), region = 99 }
 0x241   :  { %591 = vsyncpa [#allocation3], 1 }
 0x242   :  { %593 = vsyncpa [#allocation3 + $0x1], 1 }
 0x243   :  { %594 = vsyncpa [#allocation4], 1 }
 0x244   :  { %596 = vsyncpa [#allocation4 + $0x1], 1 }
 0x245   :  { %597 = vsyncpa [#allocation7], 1 }
 0x246   :  { %599 = vsyncpa [#allocation7 + $0x1], 1 }

</bundles_post_ra>
